<compile_context>
chip_gen: v6e
topology: v6e:2x2x1
jax: 0.10.0
libtpu: 0.0.40
codegen_flags: <defaults>
</compile_context>

<pallas_src>
import jax
import jax.numpy as jnp
from jax.experimental import pallas as pl
from jax.experimental.pallas import tpu as pltpu

HIDDEN1 = 128
HIDDEN2 = 32
OUT = 1
DEFAULT_TB = 4096          # batch rows per grid step (multiple of 128)
_SINGLE_BLOCK_MAX = 512    # batches up to this many rows run as a single block


def _round_up(n, m):
    return ((n + m - 1) // m) * m


def _choose_tb(batch, block_batch):
    """Pick the batch tile.

    * batch <= _SINGLE_BLOCK_MAX: one block (tb == padded batch, multiple of 8),
      so tiny calls pay a single grid step.
    * larger batches: >= 2 grid steps (v7x: both TensorCores get work), with tb
      a multiple of 128 so the lane-dense (1, tb) output blocks satisfy the
      (8, 128) BlockSpec rule and store with full, unmasked lanes.
    """
    b8 = _round_up(batch, 8)
    if b8 <= _SINGLE_BLOCK_MAX:
        return b8
    block_batch = max(128, (block_batch // 128) * 128)
    return min(block_batch, _round_up(pl.cdiv(b8, 2), 128))


def _critic_kernel(x_ref, w1_ref, b1_ref, w2_ref, b2_ref, w3r_ref, b3_ref, o_ref):
    x = x_ref[...]                                                      # (TB, D)
    h1 = jnp.dot(x, w1_ref[...], preferred_element_type=jnp.float32)    # (TB, 128)
    h1 = jnp.maximum(h1 + b1_ref[...], 0.0)                             # ReLU
    h2 = jnp.dot(h1, w2_ref[...], preferred_element_type=jnp.float32)   # (TB, 32)
    h2 = jnp.maximum(h2 + b2_ref[...], 0.0)                             # ReLU
    # Layer 3 (32 -> 1): VPU multiply + XLU lane reduce instead of a lane-sparse
    # MXU matmul with a 1-wide output.
    out = jnp.sum(h2 * w3r_ref[...], axis=-1, keepdims=True) + b3_ref[...]  # (TB, 1)
    # Lane-dense writeback: one in-kernel (TB,1)->(1,TB) relayout so the output
    # store is full-lane and the writeback DMA is dense (no masked 1-lane vst).
    o_ref[...] = out.reshape(1, -1).astype(o_ref.dtype)


def ddpg_critic_forward(x, params, *, block_batch=DEFAULT_TB):
    """x: (B, state_size+action_size) f32. Returns (B, 1) f32."""
    w1, b1, w2, b2, w3, b3 = params
    B, in_dim = x.shape

    tb = _choose_tb(B, block_batch)
    b_pad = _round_up(B, tb)
    if b_pad != B:
        x = jnp.pad(x, ((0, b_pad - B), (0, 0)))
    grid = (b_pad // tb,)

    # (32, 1) column -> (1, 32) row for the in-kernel VPU/XLU reduction.
    w3_row = w3.reshape(1, HIDDEN2)

    const = lambda i: (0, 0)  # weights/biases: fetched once, VMEM-resident
    flops = 2 * b_pad * (in_dim * HIDDEN1 + HIDDEN1 * HIDDEN2 + HIDDEN2)
    bytes_accessed = 4 * (b_pad * in_dim + w1.size + b1.size + w2.size
                          + b2.size + w3.size + b3.size + b_pad * OUT)

    out = pl.pallas_call(
        _critic_kernel,
        out_shape=jax.ShapeDtypeStruct((1, b_pad), jnp.float32),  # lane-dense slab
        grid=grid,
        in_specs=[
            pl.BlockSpec((tb, in_dim), lambda i: (i, 0)),      # x: streamed
            pl.BlockSpec((in_dim, HIDDEN1), const),            # w1
            pl.BlockSpec((1, HIDDEN1), const),                 # b1
            pl.BlockSpec((HIDDEN1, HIDDEN2), const),           # w2
            pl.BlockSpec((1, HIDDEN2), const),                 # b2
            pl.BlockSpec((1, HIDDEN2), const),                 # w3 (row)
            pl.BlockSpec((1, 1), const),                       # b3
        ],
        out_specs=pl.BlockSpec((1, tb), lambda i: (0, i)),
        compiler_params=pltpu.CompilerParams(
            dimension_semantics=("parallel",),                 # v7x: 2 TCs
            vmem_limit_bytes=32 * 1024 * 1024,                 # headroom on v5e (16 MiB default)
        ),
        cost_estimate=pl.CostEstimate(
            flops=flops, transcendentals=0, bytes_accessed=bytes_accessed),
    )(x, w1, b1, w2, b2, w3_row, b3)

    # Undo the lane-dense layout in the wrapper (cheap XLA op on B floats).
    return out[0, :B].reshape(B, OUT)


def init_params(key, in_dim):
    """Deterministic init mimicking nn.Linear (U[-1/sqrt(fan_in), 1/sqrt(fan_in)])."""
    def linear(k, fan_in, fan_out):
        kw, kb = jax.random.split(k)
        bound = 1.0 / jnp.sqrt(fan_in)
        w = jax.random.uniform(kw, (fan_in, fan_out), jnp.float32, -bound, bound)
        b = jax.random.uniform(kb, (1, fan_out), jnp.float32, -bound, bound)
        return w, b

    k1, k2, k3 = jax.random.split(key, 3)
    w1, b1 = linear(k1, in_dim, HIDDEN1)
    w2, b2 = linear(k2, HIDDEN1, HIDDEN2)
    w3, b3 = linear(k3, HIDDEN2, OUT)
    return (w1, b1, w2, b2, w3, b3)


def _reference(x, params):
    w1, b1, w2, b2, w3, b3 = params
    h = jnp.maximum(x @ w1 + b1, 0.0)
    h = jnp.maximum(h @ w2 + b2, 0.0)
    return h @ w3 + b3


if __name__ == "__main__":
    # Shapes consistent with the module: state_size=24, action_size=4 -> 28 inputs.
    state_size = 24
    action_size = 4
    in_dim = state_size + action_size

    key = jax.random.PRNGKey(0)
    kx1, kx2, kx3, kp = jax.random.split(key, 4)
    params = init_params(kp, in_dim)

    # Small batch: single block, grid=(1,).
    x_small = jax.random.normal(kx1, (8, in_dim), jnp.float32)
    out_small = jax.block_until_ready(ddpg_critic_forward(x_small, params))
    ref_small = _reference(x_small, params)
    assert out_small.shape == (8, OUT)
    assert jnp.allclose(out_small, ref_small, atol=1e-4, rtol=1e-4), "mismatch (small batch)"

    # Ragged batch: exercises padding + >=2 grid steps (B=1000 -> tb=512, grid=(2,)).
    x_mid = jax.random.normal(kx3, (1000, in_dim), jnp.float32)
    out_mid = jax.block_until_ready(ddpg_critic_forward(x_mid, params))
    ref_mid = _reference(x_mid, params)
    assert out_mid.shape == (1000, OUT)
    assert jnp.allclose(out_mid, ref_mid, atol=1e-4, rtol=1e-4), "mismatch (ragged batch)"

    # Larger batch: B=2048 -> tb=1024, grid=(2,), lane-dense (1, 1024) output blocks.
    x_big = jax.random.normal(kx2, (2048, in_dim), jnp.float32)
    out_big = jax.block_until_ready(ddpg_critic_forward(x_big, params))
    ref_big = _reference(x_big, params)
    assert out_big.shape == (2048, OUT)
    assert jnp.allclose(out_big, ref_big, atol=1e-4, rtol=1e-4), "mismatch (large batch)"

    print("KERNEL_OK")
</pallas_src>

<mosaic_0001>
module attributes {stable_mosaic.version = 11 : i64} {
  func.func @_critic_kernel(%arg0: i32, %arg1: memref<8x28xf32, #tpu.memory_space<vmem>>, %arg2: memref<28x128xf32, #tpu.memory_space<vmem>>, %arg3: memref<1x128xf32, #tpu.memory_space<vmem>>, %arg4: memref<128x32xf32, #tpu.memory_space<vmem>>, %arg5: memref<1x32xf32, #tpu.memory_space<vmem>>, %arg6: memref<1x32xf32, #tpu.memory_space<vmem>>, %arg7: memref<1x1xf32, #tpu.memory_space<vmem>>, %arg8: memref<1x8xf32, #tpu.memory_space<vmem>>) attributes {dimension_semantics = [#tpu.dimension_semantics<parallel>], iteration_bounds = array<i64: 1>, scalar_prefetch = 0 : i64, scratch_operands = 0 : i64, tpu.core_type = #tpu.core_type<tc>, window_params = [{transform_indices = @transform_0, window_bounds = array<i64: 8, 28>}, {pipeline_mode = #tpu.pipeline_mode<synchronous>, transform_indices = @transform_1, window_bounds = array<i64: 28, 128>}, {pipeline_mode = #tpu.pipeline_mode<synchronous>, transform_indices = @transform_2, window_bounds = array<i64: 1, 128>}, {pipeline_mode = #tpu.pipeline_mode<synchronous>, transform_indices = @transform_3, window_bounds = array<i64: 128, 32>}, {pipeline_mode = #tpu.pipeline_mode<synchronous>, transform_indices = @transform_4, window_bounds = array<i64: 1, 32>}, {pipeline_mode = #tpu.pipeline_mode<synchronous>, transform_indices = @transform_5, window_bounds = array<i64: 1, 32>}, {pipeline_mode = #tpu.pipeline_mode<synchronous>, transform_indices = @transform_6, window_bounds = array<i64: 1, 1>}, {transform_indices = @transform_7, window_bounds = array<i64: 1, 8>}]} {
    %c0 = arith.constant 0 : index
    %c0_0 = arith.constant 0 : index
    %0 = vector.load %arg1[%c0, %c0_0] : memref<8x28xf32, #tpu.memory_space<vmem>>, vector<8x28xf32>
    %c0_1 = arith.constant 0 : index
    %c0_2 = arith.constant 0 : index
    %1 = vector.load %arg2[%c0_1, %c0_2] : memref<28x128xf32, #tpu.memory_space<vmem>>, vector<28x128xf32>
    %cst = arith.constant dense<0.000000e+00> : vector<8x128xf32>
    %2 = tpu.matmul %0, %1, %cst {dimension_numbers = #tpu.dot_dimension_numbers<[1], [0], [0], [1], [0, 0, 1, 1], [], []>} : vector<8x28xf32>, vector<28x128xf32>, vector<8x128xf32> -> vector<8x128xf32>
    %c0_3 = arith.constant 0 : index
    %c0_4 = arith.constant 0 : index
    %3 = vector.load %arg3[%c0_3, %c0_4] : memref<1x128xf32, #tpu.memory_space<vmem>>, vector<1x128xf32>
    %4 = vector.broadcast %3 : vector<1x128xf32> to vector<8x128xf32>
    %5 = arith.addf %2, %4 : vector<8x128xf32>
    %cst_5 = arith.constant 0.000000e+00 : f32
    %6 = vector.broadcast %cst_5 : f32 to vector<8x128xf32>
    %7 = arith.maximumf %5, %6 : vector<8x128xf32>
    %c0_6 = arith.constant 0 : index
    %c0_7 = arith.constant 0 : index
    %8 = vector.load %arg4[%c0_6, %c0_7] : memref<128x32xf32, #tpu.memory_space<vmem>>, vector<128x32xf32>
    %cst_8 = arith.constant dense<0.000000e+00> : vector<8x32xf32>
    %9 = tpu.matmul %7, %8, %cst_8 {dimension_numbers = #tpu.dot_dimension_numbers<[1], [0], [0], [1], [0, 0, 1, 1], [], []>} : vector<8x128xf32>, vector<128x32xf32>, vector<8x32xf32> -> vector<8x32xf32>
    %c0_9 = arith.constant 0 : index
    %c0_10 = arith.constant 0 : index
    %10 = vector.load %arg5[%c0_9, %c0_10] : memref<1x32xf32, #tpu.memory_space<vmem>>, vector<1x32xf32>
    %11 = vector.broadcast %10 : vector<1x32xf32> to vector<8x32xf32>
    %12 = arith.addf %9, %11 : vector<8x32xf32>
    %cst_11 = arith.constant 0.000000e+00 : f32
    %13 = vector.broadcast %cst_11 : f32 to vector<8x32xf32>
    %14 = arith.maximumf %12, %13 : vector<8x32xf32>
    %c0_12 = arith.constant 0 : index
    %c0_13 = arith.constant 0 : index
    %15 = vector.load %arg6[%c0_12, %c0_13] : memref<1x32xf32, #tpu.memory_space<vmem>>, vector<1x32xf32>
    %16 = vector.broadcast %15 : vector<1x32xf32> to vector<8x32xf32>
    %17 = arith.mulf %14, %16 : vector<8x32xf32>
    %cst_14 = arith.constant dense<0.000000e+00> : vector<8xf32>
    %18 = vector.multi_reduction <add>, %17, %cst_14 [1] : vector<8x32xf32> to vector<8xf32>
    %19 = vector.shape_cast %18 : vector<8xf32> to vector<8x1xf32>
    %c0_15 = arith.constant 0 : index
    %c0_16 = arith.constant 0 : index
    %20 = vector.load %arg7[%c0_15, %c0_16] : memref<1x1xf32, #tpu.memory_space<vmem>>, vector<1x1xf32>
    %21 = vector.broadcast %20 : vector<1x1xf32> to vector<8x1xf32>
    %22 = arith.addf %19, %21 : vector<8x1xf32>
    %23 = vector.shape_cast %22 : vector<8x1xf32> to vector<1x8xf32>
    %c0_17 = arith.constant 0 : index
    %c0_18 = arith.constant 0 : index
    %24 = vector.load %arg8[%c0_17, %c0_18] : memref<1x8xf32, #tpu.memory_space<vmem>>, vector<1x8xf32>
    tpu.vector_store %arg8[%c0_17, %c0_18], %23 {strides = array<i32>} : memref<1x8xf32, #tpu.memory_space<vmem>>, vector<1x8xf32>,
    return
  }
  func.func @transform_0(%arg0: i32) -> (i32, i32) {
    %c0_i32 = arith.constant 0 : i32
    %c0_i32_0 = arith.constant 0 : i32
    return %arg0, %c0_i32 : i32, i32
  }
  func.func @transform_1(%arg0: i32) -> (i32, i32) {
    %c0_i32 = arith.constant 0 : i32
    %c0_i32_0 = arith.constant 0 : i32
    %c0_i32_1 = arith.constant 0 : i32
    return %c0_i32, %c0_i32_0 : i32, i32
  }
  func.func @transform_2(%arg0: i32) -> (i32, i32) {
    %c0_i32 = arith.constant 0 : i32
    %c0_i32_0 = arith.constant 0 : i32
    %c0_i32_1 = arith.constant 0 : i32
    return %c0_i32, %c0_i32_0 : i32, i32
  }
  func.func @transform_3(%arg0: i32) -> (i32, i32) {
    %c0_i32 = arith.constant 0 : i32
    %c0_i32_0 = arith.constant 0 : i32
    %c0_i32_1 = arith.constant 0 : i32
    return %c0_i32, %c0_i32_0 : i32, i32
  }
  func.func @transform_4(%arg0: i32) -> (i32, i32) {
    %c0_i32 = arith.constant 0 : i32
    %c0_i32_0 = arith.constant 0 : i32
    %c0_i32_1 = arith.constant 0 : i32
    return %c0_i32, %c0_i32_0 : i32, i32
  }
  func.func @transform_5(%arg0: i32) -> (i32, i32) {
    %c0_i32 = arith.constant 0 : i32
    %c0_i32_0 = arith.constant 0 : i32
    %c0_i32_1 = arith.constant 0 : i32
    return %c0_i32, %c0_i32_0 : i32, i32
  }
  func.func @transform_6(%arg0: i32) -> (i32, i32) {
    %c0_i32 = arith.constant 0 : i32
    %c0_i32_0 = arith.constant 0 : i32
    %c0_i32_1 = arith.constant 0 : i32
    return %c0_i32, %c0_i32_0 : i32, i32
  }
  func.func @transform_7(%arg0: i32) -> (i32, i32) {
    %c0_i32 = arith.constant 0 : i32
    %c0_i32_0 = arith.constant 0 : i32
    return %c0_i32, %arg0 : i32, i32
  }
}

</mosaic_0001>

<bundles_post_ra>
// kernel: tpu_custom_call.1
= control target key start
LH: loop header
LB: loop body
LE: loop exit
PB: predicated region body
PF: predicated region fallthrough
CT: control target
= control target key end

     0   :  { %s508_s0 = inlined_call_operand.vmem [shape: f32[8,28], index: 0, kind: input, shape index: {}]   ;;  %s509_s1 = inlined_call_operand.vmem [shape: f32[28,128], index: 1, kind: input, shape index: {}]   ;;  %s510_s2 = inlined_call_operand.vmem [shape: f32[1,128], index: 2, kind: input, shape index: {}]   ;;  %s511_s3 = inlined_call_operand.vmem [shape: f32[128,32], index: 3, kind: input, shape index: {}]   ;;  %s512_s4 = inlined_call_operand.vmem [shape: f32[1,32], index: 4, kind: input, shape index: {}]   ;;  %s513_s5 = inlined_call_operand.vmem [shape: f32[1,32], index: 5, kind: input, shape index: {}]   ;;  %s514_s6 = inlined_call_operand.<no memory space> [shape: f32[1,1], index: 6, kind: input, shape index: {}]   ;;  %s515_s7 = inlined_call_operand.hbm [shape: f32[1,8], index: 7, kind: output, shape index: {}]  }
   0x1   :  { %v12_v0 = vstv %s514_s6 }
   0x2   :  { %13 = vst [vmem:[#allocation2] sm:$0x1] %v12_v0 }
   0x3   :  { %v33_v1 = vld [vmem:[%s509_s1 + $0x18] sm:$0xf]  ;;  %vm45_vm0 = vcmask 1043456   ;;  %v362_v2 = vmov 0.0   ;;  %v32_v3 = vld [vmem:[%s509_s1 + $0x10] sm:$0xff]  ;;  %vm363_vm1 = vmmov 0  }
   0x4   :  { %289 = vmatprep.subr.mxu0 %v362_v2  ;;  %300 = vmatprep.subr.mxu1 %v362_v2  ;;  %v135_v4 = vld [vmem:[%s511_s3 + $0x78] sm:$0xff]  ;;  %v134_v5 = vld [vmem:[%s511_s3 + $0x70] sm:$0xff]  ;;  %v31_v6 = vld [vmem:[%s509_s1 + $0x8] sm:$0xff]  ;;  %vm41_vm2 = vcmask 228352  }
   0x5   :  { %290 = vmatpush3.msk.msra.mxu0 %vm45_vm0, %v33_v1  ;;  %297 = vmatprep.mubr.msk.f32.mxu0 %vm363_vm1, %v362_v2  ;;  %v133_v7 = vld [vmem:[%s511_s3 + $0x68] sm:$0xff]  ;;  %v30_v8 = vld [vmem:[%s509_s1] sm:$0xff] }
   0x6   :  { %291 = vmatprep.subr.mxu0 %v362_v2  ;;  %301 = vmatpush3.msra.mxu1 %v135_v4  ;;  %v29_v9 = vld [vmem:[%s508_s0] sm:$0xff] }
   0x7   :  { %292 = vmatpush3.msra.mxu0 %v32_v3  ;;  %302 = vmatprep.subr.mxu1 %v362_v2  ;;  %v132_v10 = vld [vmem:[%s511_s3 + $0x60] sm:$0xff] }
   0x8   :  { %293 = vmatprep.subr.mxu0 %v362_v2  ;;  %303 = vmatpush3.msra.mxu1 %v134_v5 }
   0x9   :  { %294 = vmatpush3.msra.mxu0 %v31_v6  ;;  %304 = vmatprep.subr.mxu1 %v362_v2 }
   0xa   :  { %14 = vsyncpa [#allocation4], 0  ;;  %295 = vmatprep.subr.mxu0 %v362_v2  ;;  %305 = vmatpush3.msra.mxu1 %v133_v7  ;;  %v131_v11 = vld [vmem:[%s511_s3 + $0x58] sm:$0xff]  ;;  %v130_v12 = vld [vmem:[%s511_s3 + $0x50] sm:$0xff]  ;;  %vm222_vm3 = vcmask 261120   ;;  %v364_v36 = vmov 0   ;;  %v238_v40 = vlaneseq }
   0xb   :  { %296 = vmatpush3.msra.mxu0 %v30_v8  ;;  %306 = vmatprep.subr.mxu1 %v362_v2  ;;  %v129_v13 = vld [vmem:[%s511_s3 + $0x48] sm:$0xff]  ;;  %v128_v14 = vld [vmem:[%s511_s3 + $0x40] sm:$0xff]  ;;  %v127_v15 = vld [vmem:[%s511_s3 + $0x38] sm:$0xff]  ;;  %vm245_vm4 = vcmask 57344  }
   0xc   :  { %298 = vmatmul.mubr.msk.f32.vlgmr.msra.gmra.mxu0 %vm41_vm2, %v29_v9  ;;  %307 = vmatpush3.msra.mxu1 %v132_v10  ;;  %v126_v16 = vld [vmem:[%s511_s3 + $0x30] sm:$0xff]  ;;  %v125_v17 = vld [vmem:[%s511_s3 + $0x28] sm:$0xff]  ;;  %v124_v18 = vld [vmem:[%s511_s3 + $0x20] sm:$0xff]  ;;  %v239_v41 = vand.u32 127, %v238_v40  ;;  %v241_v42 = vshrl.u32 %v238_v40, 7 }
   0xd   :  { %308 = vmatprep.subr.mxu1 %v362_v2  ;;  %332 = vmatprep.mubr.msk.f32.mxu1 %vm363_vm1, %v362_v2  ;;  %v123_v19 = vld [vmem:[%s511_s3 + $0x18] sm:$0xff]  ;;  %v122_v20 = vld [vmem:[%s511_s3 + $0x10] sm:$0xff]  ;;  %v121_v21 = vld [vmem:[%s511_s3 + $0x8] sm:$0xff] }
   0xe   :  { %309 = vmatpush3.msra.mxu1 %v131_v11  ;;  %v120_v22 = vld [vmem:[%s511_s3] sm:$0xff]  ;;  %339 = vset.pattern.permute.xlu0 %v364_v36  ;;  %v242_v43 = vsub.s32 %v239_v41, %v241_v42 }
   0xf   :  { %310 = vmatprep.subr.mxu1 %v362_v2  ;;  %v261_v23 = vld [vmem:[%s510_s2] ss:$0 sm:$0xff]  ;;  %s365_s2 = smov [#allocation3]  }
  0x10   :  { %311 = vmatpush3.msra.mxu1 %v130_v12  ;;  %v264_v28 = vld [vmem:[%s512_s4] ss:$0 sm:$0xff]  ;;  %s253_s3 = sshll.u32 %s365_s2, 4  ;;  %s254_s3 = int_to_ptr.vmem [resolvable:$true] %s253_s3 }
  0x11   :  { %312 = vmatprep.subr.mxu1 %v362_v2  ;;  %v265_v32 = vld [vmem:[%s513_s5] ss:$0 sm:$0xff]  ;;  %s340_s4 = scalar_lea.vmem %s254_s3, 16  ;;  %s344_s5 = scalar_lea.vmem %s254_s3, 32 }
  0x12   :  { %313 = vmatpush3.msra.mxu1 %v129_v13  ;;  %v266_v37 = vld [vmem:[#allocation2] ss:$0 sm:$0xff]  ;;  %p341_p0 = scmp.ne.s32.totalorder %s254_s3, %s340_s4  ;;  %p345_p1 = scmp.lt.s32.totalorder %s254_s3, %s254_s3 }
  0x13   :  { %314 = vmatprep.subr.mxu1 %v362_v2  ;;  %p346_p2 = scmp.lt.s32.totalorder %s344_s5, %s340_s4 }
  0x14   :  { %315 = vmatpush3.msra.mxu1 %v128_v14 }
  0x15   :  { %316 = vmatprep.subr.mxu1 %v362_v2  ;;  %p347_p3 = por %p346_p2, %p345_p1 }
  0x16   :  { %317 = vmatpush3.msra.mxu1 %v127_v15 }
  0x17   :  { %318 = vmatprep.subr.mxu1 %v362_v2  ;;  %p348_p4 = pnand %p347_p3, %p341_p0 }
  0x18   :  { %319 = vmatpush3.msra.mxu1 %v126_v16 }
  0x19   :  { %320 = vmatprep.subr.mxu1 %v362_v2 }
  0x1a   :  { %321 = vmatpush3.msra.mxu1 %v125_v17 }
  0x1b   :  { %322 = vmatprep.subr.mxu1 %v362_v2 }
  0x1c   :  { %323 = vmatpush3.msra.mxu1 %v124_v18 }
  0x1d   :  { %324 = vmatprep.subr.mxu1 %v362_v2 }
  0x1e   :  { %325 = vmatpush3.msra.mxu1 %v123_v19 }
  0x1f   :  { %326 = vmatprep.subr.mxu1 %v362_v2 }
  0x20   :  { %327 = vmatpush3.msra.mxu1 %v122_v20 }
  0x21   :  { %328 = vmatprep.subr.mxu1 %v362_v2 }
  0x22   :  { %329 = vmatpush3.msra.mxu1 %v121_v21 }
  0x23   :  { %330 = vmatprep.subr.mxu1 %v362_v2 }
  0x24   :  { %331 = vmatpush3.msra.mxu1 %v120_v22 }
  0xcc   :  { %v115_v24 = vpop.f32.mrf.mxu0 }
  0xcd   :  { %v116_v25 = vadd.f32 %v261_v23, %v115_v24 }
  0xce   :  { %v299_v26 = vpop.f32.mrf.mxu0 }
  0xcf   :  { %v119_v27 = vmax.f32 %v116_v25, 0.0 }
  0xd1   :  { %333 = vmatmul.mubr.f32.vlgmr.msra.gmra.mxu1 %v119_v27 }
 0x191   :  { %v209_v29 = vpop.f32.mrf.mxu1 }
 0x192   :  { %v210_v30 = vadd.f32 %v264_v28, %v209_v29 }
 0x193   :  { %v334_v31 = vpop.f32.mrf.mxu1 }
 0x194   :  { %v213_v33 = vmax.f32 %v210_v30, 0.0 }
 0x196   :  { %v221_v34 = vmul.f32 %v265_v32, %v213_v33 }
 0x198   :  { %v223_v35 = vsel %vm222_vm3, %v221_v34, 0.0 }
 0x199   :  { %224 = vadd.xlane.f32.xlu0 %v223_v35 }
 0x222   :  { %v225_v38 = vpop.xlane.xlu0 %224 }
 0x223   :  { %v233_v39 = vadd.f32 %v266_v37, %v225_v38 }
 0x225   :  { %236 = vperm.xlu0 %339, %v233_v39  }
 0x2a0   :  { %v237_v44 = vpop.permute.xlu0 %236 }
 0x2a1   :  { %v243_v45 = vrot.slane %v237_v44, %v242_v43 }
 0x2a3   :  { %246 = vst.msk [vmem:[#allocation3] sm:$0x1] %vm245_vm4, %v243_v45 }
 0x2a4   :  { %351 = shalt.err (!%p348_p4)
}
 0x2a5   :  { %256 = dma.vmem_to_hbm [thread:$0]  %s254_s3, 16, %s515_s7, [#allocation4]  }
 0x2a6   :  { %360 = dma.done.wait [#allocation4], 16  }
 0x2a7   :  { %361 = vsyncadd [#allocation4], 4294967280 }
 0x2a8   :  { %260 = vsyncpa [#allocation4], 1 }

</bundles_post_ra>
